<compile_context>
chip_gen: v6e
topology: v6e:2x2x1
jax: 0.10.0
libtpu: 0.0.40
codegen_flags: <defaults>
</compile_context>

<pallas_src>
import functools

import jax
import jax.numpy as jnp
from jax import lax
from jax.experimental import pallas as pl
from jax.experimental.pallas import tpu as pltpu


def _round_up(x, m):
    return ((x + m - 1) // m) * m


def _lstm_recurrence_kernel(xg_ref, whh_ref, bias_ref, hout_ref, h_ref, c_ref,
                            *, hidden, seq_len, time_chunk, unroll, gate_dtype):
    """Grid = (batch_tiles ['parallel'], time_chunks ['arbitrary']).

    xg_ref  : (Tc, Btile, G)   x_t @ W_ih^T, streamed (bf16 by default)
    whh_ref : (H, G)           W_hh^T, whole array resident in VMEM (1 copy)
    bias_ref: (1, G)  f32      b_ih + b_hh (added in-kernel, full precision)
    hout_ref: (Btile, H) f32   final hidden state of this batch tile
    h_ref/c_ref : (Btile, H) f32 scratch carrying the recurrence across chunks
    """
    t_blk = pl.program_id(1)

    @pl.when(t_blk == 0)
    def _():
        h_ref[...] = jnp.zeros_like(h_ref)
        c_ref[...] = jnp.zeros_like(c_ref)

    # Hoisted out of the time loop: weights stay resident / stationary,
    # bias is loaded once.
    # TODO(synk): for very small Btile, drive the MXU weight-stationary with
    # pltpu.matmul_push_rhs once per chunk + matmul_acc_lhs/matmul_pop per step.
    w = whh_ref[...]
    bias = bias_ref[...]                      # (1, G) f32, broadcast over batch
    H = hidden
    tc = time_chunk
    ragged = (seq_len % tc) != 0
    base_t = t_blk * tc

    def step(t, carry):
        h, c = carry
        gates = (xg_ref[t].astype(jnp.float32) + bias
                 + jnp.dot(h.astype(w.dtype), w,
                           preferred_element_type=jnp.float32))
        if gate_dtype != jnp.dtype(jnp.float32):
            gates = gates.astype(gate_dtype)   # bf16 EUP only pays off on v6e/v7x
        # PyTorch gate order: input, forget, cell(g), output.
        i = jax.nn.sigmoid(gates[:, 0 * H:1 * H]).astype(jnp.float32)
        f = jax.nn.sigmoid(gates[:, 1 * H:2 * H]).astype(jnp.float32)
        g = jnp.tanh(gates[:, 2 * H:3 * H]).astype(jnp.float32)
        o = jax.nn.sigmoid(gates[:, 3 * H:4 * H]).astype(jnp.float32)
        c_new = f * c + i * g
        h_new = o * jnp.tanh(c_new)
        if ragged:
            valid = (base_t + t) < seq_len     # mask padded tail timesteps
            h_new = jnp.where(valid, h_new, h)
            c_new = jnp.where(valid, c_new, c)
        return h_new, c_new

    h, c = lax.fori_loop(0, tc, step, (h_ref[...], c_ref[...]), unroll=unroll)
    h_ref[...] = h
    c_ref[...] = c

    @pl.when(t_blk == pl.num_programs(1) - 1)
    def _():
        hout_ref[...] = h.astype(hout_ref.dtype)


def lstm_classifier_forward(tokens, params, *,
                            matmul_dtype=jnp.bfloat16,
                            xg_dtype=None,
                            gate_dtype=jnp.float32,
                            batch_tiles=None,
                            max_time_chunk=128,
                            vmem_budget_bytes=40 * 1024 * 1024):
    """tokens: (batch, seq) int32. Returns (batch, output_size) f32 logits.

    matmul_dtype : dtype for the MXU matmuls / W_hh^T (bf16 = production).
    xg_dtype     : dtype of the streamed gate pre-activations (default = matmul_dtype).
    gate_dtype   : dtype of the sigmoid/tanh inputs; bf16 is worthwhile on
                   v6e/v7x only (v5e has no bf16 VPU/EUP), default f32.
    batch_tiles  : leading 'parallel' grid split (2 -> v7x dual-TensorCore).
    vmem_budget_bytes : budget used to derive the time chunk Tc (v7x-safe default).
    """
    emb = params["embedding"]          # (vocab, E)
    w_ih = params["w_ih"]              # (4H, E)   PyTorch layout
    w_hh = params["w_hh"]              # (4H, H)
    b_ih = params["b_ih"]              # (4H,)
    b_hh = params["b_hh"]              # (4H,)
    w_label = params["w_label"]        # (O, H)
    b_label = params["b_label"]        # (O,)

    if xg_dtype is None:
        xg_dtype = matmul_dtype
    matmul_dtype = jnp.dtype(matmul_dtype)
    xg_dtype = jnp.dtype(xg_dtype)
    gate_dtype = jnp.dtype(gate_dtype)

    B, S = tokens.shape
    H = w_hh.shape[1]
    G = _round_up(4 * H, 128)          # single contiguous pad of the 4H gate axis

    # Batch tiling: split into 2 tiles when big enough so v7x's two TensorCores
    # each run half the batch (leading grid axis is 'parallel'); else one tile.
    if batch_tiles is None:
        batch_tiles = 2 if B > 8 else 1
    Bp = _round_up(B, 8 * batch_tiles)
    Btile = Bp // batch_tiles

    # Time chunk from a VMEM budget (xg is double-buffered; W_hh/bias resident).
    fixed = (H * G * matmul_dtype.itemsize      # resident W_hh^T (single copy)
             + G * 4                            # resident bias
             + 2 * Btile * H * 4                # h/c scratch
             + 2 * Btile * H * 4)               # output buffers
    per_t = 2 * Btile * G * xg_dtype.itemsize   # double-buffered xg per timestep
    tc_cap = max(1, (vmem_budget_bytes - fixed) // per_t)
    Tc = int(max(1, min(S, max_time_chunk, tc_cap)))
    n_chunks = pl.cdiv(S, Tc)
    S_pad = n_chunks * Tc

    # Bound the unroll so unrolled (Btile, G) f32 gate tiles don't blow the
    # 64 x 4 KiB vreg file.
    unroll = int(max(1, min(Tc, 8, (128 * 1024) // max(1, Btile * G * 4))))

    # ---- glue (XLA): time-major embedding gather (no activation transpose) ----
    x = jnp.take(emb, tokens.T, axis=0)                    # (S, B, E)
    if Bp != B:
        x = jnp.pad(x, ((0, 0), (0, Bp - B), (0, 0)))      # (S, Bp, E)

    # ---- weights: pad the 4H gate axis once to G (no per-gate blow-up) ----
    wih_p = jnp.pad(w_ih, ((0, G - 4 * H), (0, 0)))        # (G, E)
    whh_p = jnp.pad(w_hh, ((0, G - 4 * H), (0, 0)))        # (G, H)
    whh_t = whh_p.T.astype(matmul_dtype)                   # (H, G)
    bias = jnp.pad((b_ih + b_hh).astype(jnp.float32),
                   (0, G - 4 * H)).reshape(1, G)           # (1, G) f32

    # ---- hoisted input projection (one big matmul), streamed in xg_dtype ----
    xg = jnp.einsum("sbe,ge->sbg",
                    x.astype(matmul_dtype), wih_p.astype(matmul_dtype),
                    preferred_element_type=jnp.float32).astype(xg_dtype)
    if S_pad != S:
        xg = jnp.pad(xg, ((0, S_pad - S), (0, 0), (0, 0)))  # zero tail, masked in-kernel

    kernel = functools.partial(
        _lstm_recurrence_kernel,
        hidden=H, seq_len=S, time_chunk=Tc, unroll=unroll, gate_dtype=gate_dtype)

    h_final = pl.pallas_call(
        kernel,
        out_shape=jax.ShapeDtypeStruct((Bp, H), jnp.float32),
        grid_spec=pltpu.PrefetchScalarGridSpec(
            num_scalar_prefetch=0,
            grid=(batch_tiles, n_chunks),
            in_specs=[
                pl.BlockSpec((Tc, Btile, G), lambda b, t: (t, b, 0)),   # xg stream
                pl.BlockSpec(memory_space=pltpu.MemorySpace.VMEM),      # W_hh^T resident
                pl.BlockSpec(memory_space=pltpu.MemorySpace.VMEM),      # bias resident
            ],
            out_specs=pl.BlockSpec((Btile, H), lambda b, t: (b, 0)),    # final h
            scratch_shapes=[
                pltpu.VMEM((Btile, H), jnp.float32),   # h state
                pltpu.VMEM((Btile, H), jnp.float32),   # c state
            ],
        ),
        compiler_params=pltpu.CompilerParams(
            dimension_semantics=("parallel", "arbitrary"),   # batch || , time seq
            vmem_limit_bytes=int(min(vmem_budget_bytes + (8 << 20), 112 << 20)),
        ),
    )(xg, whh_t, bias)

    # ---- glue (XLA): tiny final linear on the unpadded hidden state ----
    h = h_final[:B, :]
    return h @ w_label.T + b_label


def init_params(key, vocab_size, embedding_length, hidden_size, output_size):
    ks = jax.random.split(key, 8)
    H, E, O = hidden_size, embedding_length, output_size
    k_lstm = 1.0 / jnp.sqrt(H)
    k_lin = 1.0 / jnp.sqrt(H)
    return {
        "embedding": jax.random.normal(ks[0], (vocab_size, E), jnp.float32),
        "w_ih": jax.random.uniform(ks[1], (4 * H, E), jnp.float32, -k_lstm, k_lstm),
        "w_hh": jax.random.uniform(ks[2], (4 * H, H), jnp.float32, -k_lstm, k_lstm),
        "b_ih": jax.random.uniform(ks[3], (4 * H,), jnp.float32, -k_lstm, k_lstm),
        "b_hh": jax.random.uniform(ks[4], (4 * H,), jnp.float32, -k_lstm, k_lstm),
        "w_label": jax.random.uniform(ks[5], (O, H), jnp.float32, -k_lin, k_lin),
        "b_label": jax.random.uniform(ks[6], (O,), jnp.float32, -k_lin, k_lin),
    }


def reference_forward(tokens, params):
    """Pure-JAX reference of the same LSTM forward (sanity check)."""
    emb = jnp.take(params["embedding"], tokens, axis=0)   # (B, S, E)
    x = jnp.transpose(emb, (1, 0, 2))                      # (S, B, E)
    H = params["w_hh"].shape[1]
    B = tokens.shape[0]
    h = jnp.zeros((B, H), jnp.float32)
    c = jnp.zeros((B, H), jnp.float32)

    def step(carry, x_t):
        h, c = carry
        gates = (x_t @ params["w_ih"].T + params["b_ih"]
                 + h @ params["w_hh"].T + params["b_hh"])
        i = jax.nn.sigmoid(gates[:, 0 * H:1 * H])
        f = jax.nn.sigmoid(gates[:, 1 * H:2 * H])
        g = jnp.tanh(gates[:, 2 * H:3 * H])
        o = jax.nn.sigmoid(gates[:, 3 * H:4 * H])
        c = f * c + i * g
        h = o * jnp.tanh(c)
        return (h, c), None

    (h, c), _ = jax.lax.scan(step, (h, c), x)
    return h @ params["w_label"].T + params["b_label"]


if __name__ == "__main__":
    vocab_size = 100
    embedding_length = 32
    hidden_size = 32
    output_size = 4

    key = jax.random.PRNGKey(0)
    k_tok, k_tok2, k_par = jax.random.split(key, 3)
    params = init_params(k_par, vocab_size, embedding_length, hidden_size, output_size)

    # Case 1: baseline shapes (batch=2, seq=8), exact f32 path vs reference.
    tokens = jax.random.randint(k_tok, (2, 8), 0, vocab_size, jnp.int32)
    out_f32 = jax.block_until_ready(
        lstm_classifier_forward(tokens, params,
                                matmul_dtype=jnp.float32, xg_dtype=jnp.float32))
    ref = reference_forward(tokens, params)
    assert out_f32.shape == (2, output_size), out_f32.shape
    assert jnp.allclose(out_f32, ref, atol=1e-4, rtol=1e-4), (out_f32, ref)

    # Case 2: production dtypes (bf16 xg stream + bf16 W_hh matmul, f32 carry).
    out_bf16 = jax.block_until_ready(lstm_classifier_forward(tokens, params))
    assert out_bf16.shape == (2, output_size), out_bf16.shape
    assert jnp.allclose(out_bf16, ref, atol=1e-1, rtol=1e-1), (out_bf16, ref)

    # Case 3: ragged sequence (S=7, Tc forced to 4 -> 2 chunks + masked tail).
    tokens_r = jax.random.randint(k_tok2, (2, 7), 0, vocab_size, jnp.int32)
    out_r = jax.block_until_ready(
        lstm_classifier_forward(tokens_r, params, matmul_dtype=jnp.float32,
                                xg_dtype=jnp.float32, max_time_chunk=4))
    ref_r = reference_forward(tokens_r, params)
    assert jnp.allclose(out_r, ref_r, atol=1e-4, rtol=1e-4), (out_r, ref_r)

    # Case 4: batch split over 2 parallel tiles (v7x dual-TensorCore path).
    tokens_b = jax.random.randint(k_tok, (16, 8), 0, vocab_size, jnp.int32)
    out_b = jax.block_until_ready(
        lstm_classifier_forward(tokens_b, params, matmul_dtype=jnp.float32,
                                xg_dtype=jnp.float32, batch_tiles=2))
    ref_b = reference_forward(tokens_b, params)
    assert jnp.allclose(out_b, ref_b, atol=1e-4, rtol=1e-4), (out_b, ref_b)

    print("KERNEL_OK")
</pallas_src>

<mosaic_0001>
module attributes {stable_mosaic.version = 11 : i64} {
  func.func @_lstm_recurrence_kernel(%arg0: i32, %arg1: i32, %arg2: memref<8x8x128xf32, #tpu.memory_space<vmem>>, %arg3: memref<32x128xf32, #tpu.memory_space<vmem>>, %arg4: memref<1x128xf32, #tpu.memory_space<vmem>>, %arg5: memref<8x32xf32, #tpu.memory_space<vmem>>, %arg6: memref<8x32xf32, #tpu.memory_space<vmem>>, %arg7: memref<8x32xf32, #tpu.memory_space<vmem>>) attributes {dimension_semantics = [#tpu.dimension_semantics<parallel>, #tpu.dimension_semantics<arbitrary>], iteration_bounds = array<i64: 1, 1>, scalar_prefetch = 0 : i64, scratch_operands = 2 : i64, tpu.core_type = #tpu.core_type<tc>, window_params = [{transform_indices = @transform_0, window_bounds = array<i64: 8, 8, 128>}, {pipeline_mode = #tpu.pipeline_mode<synchronous>, transform_indices = @transform_1, window_bounds = array<i64: 32, 128>}, {pipeline_mode = #tpu.pipeline_mode<synchronous>, transform_indices = @transform_2, window_bounds = array<i64: 1, 128>}, {transform_indices = @transform_3, window_bounds = array<i64: 8, 32>}]} {
    %c0_i32 = arith.constant 0 : i32
    %0 = arith.cmpi eq, %arg1, %c0_i32 : i32
    %1 = arith.extui %0 : i1 to i32
    %c0_i32_0 = arith.constant 0 : i32
    %2 = arith.cmpi ne, %1, %c0_i32_0 : i32
    scf.if %2 {
      %cst_62 = arith.constant 0.000000e+00 : f32
      %268 = vector.broadcast %cst_62 : f32 to vector<8x32xf32>
      %c0_63 = arith.constant 0 : index
      %c0_64 = arith.constant 0 : index
      %269 = vector.load %arg6[%c0_63, %c0_64] : memref<8x32xf32, #tpu.memory_space<vmem>>, vector<8x32xf32>
      tpu.vector_store %arg6[%c0_63, %c0_64], %268 {strides = array<i32>} : memref<8x32xf32, #tpu.memory_space<vmem>>, vector<8x32xf32>,
      %cst_65 = arith.constant 0.000000e+00 : f32
      %270 = vector.broadcast %cst_65 : f32 to vector<8x32xf32>
      %c0_66 = arith.constant 0 : index
      %c0_67 = arith.constant 0 : index
      %271 = vector.load %arg7[%c0_66, %c0_67] : memref<8x32xf32, #tpu.memory_space<vmem>>, vector<8x32xf32>
      tpu.vector_store %arg7[%c0_66, %c0_67], %270 {strides = array<i32>} : memref<8x32xf32, #tpu.memory_space<vmem>>, vector<8x32xf32>,
    } else {
    }
    %c0 = arith.constant 0 : index
    %c0_1 = arith.constant 0 : index
    %3 = vector.load %arg3[%c0, %c0_1] : memref<32x128xf32, #tpu.memory_space<vmem>>, vector<32x128xf32>
    %c0_2 = arith.constant 0 : index
    %c0_3 = arith.constant 0 : index
    %4 = vector.load %arg4[%c0_2, %c0_3] : memref<1x128xf32, #tpu.memory_space<vmem>>, vector<1x128xf32>
    %c0_4 = arith.constant 0 : index
    %c0_5 = arith.constant 0 : index
    %5 = vector.load %arg6[%c0_4, %c0_5] : memref<8x32xf32, #tpu.memory_space<vmem>>, vector<8x32xf32>
    %c0_6 = arith.constant 0 : index
    %c0_7 = arith.constant 0 : index
    %6 = vector.load %arg7[%c0_6, %c0_7] : memref<8x32xf32, #tpu.memory_space<vmem>>, vector<8x32xf32>
    %c0_i32_8 = arith.constant 0 : i32
    %7 = arith.index_cast %c0_i32_8 : i32 to index
    %c0_9 = arith.constant 0 : index
    %c0_10 = arith.constant 0 : index
    %8 = vector.load %arg2[%7, %c0_9, %c0_10] : memref<8x8x128xf32, #tpu.memory_space<vmem>>, vector<1x8x128xf32>
    %9 = vector.shape_cast %8 : vector<1x8x128xf32> to vector<8x128xf32>
    %10 = vector.broadcast %4 : vector<1x128xf32> to vector<8x128xf32>
    %11 = arith.addf %9, %10 : vector<8x128xf32>
    %cst = arith.constant dense<0.000000e+00> : vector<8x128xf32>
    %12 = tpu.matmul %5, %3, %cst {dimension_numbers = #tpu.dot_dimension_numbers<[1], [0], [0], [1], [0, 0, 1, 1], [], []>} : vector<8x32xf32>, vector<32x128xf32>, vector<8x128xf32> -> vector<8x128xf32>
    %13 = arith.addf %11, %12 : vector<8x128xf32>
    %14 = vector.extract_strided_slice %13 {offsets = [0, 0], sizes = [8, 32], strides = [1, 1]} : vector<8x128xf32> to vector<8x32xf32>
    %15 = arith.negf %14 : vector<8x32xf32>
    %16 = math.exp %15 : vector<8x32xf32>
    %cst_11 = arith.constant 1.000000e+00 : f32
    %17 = vector.broadcast %cst_11 : f32 to vector<8x32xf32>
    %18 = arith.addf %17, %16 : vector<8x32xf32>
    %19 = arith.divf %17, %18 : vector<8x32xf32>
    %20 = vector.extract_strided_slice %13 {offsets = [0, 32], sizes = [8, 32], strides = [1, 1]} : vector<8x128xf32> to vector<8x32xf32>
    %21 = arith.negf %20 : vector<8x32xf32>
    %22 = math.exp %21 : vector<8x32xf32>
    %cst_12 = arith.constant 1.000000e+00 : f32
    %23 = vector.broadcast %cst_12 : f32 to vector<8x32xf32>
    %24 = arith.addf %23, %22 : vector<8x32xf32>
    %25 = arith.divf %23, %24 : vector<8x32xf32>
    %26 = vector.extract_strided_slice %13 {offsets = [0, 64], sizes = [8, 32], strides = [1, 1]} : vector<8x128xf32> to vector<8x32xf32>
    %27 = math.tanh %26 : vector<8x32xf32>
    %28 = vector.extract_strided_slice %13 {offsets = [0, 96], sizes = [8, 32], strides = [1, 1]} : vector<8x128xf32> to vector<8x32xf32>
    %29 = arith.negf %28 : vector<8x32xf32>
    %30 = math.exp %29 : vector<8x32xf32>
    %cst_13 = arith.constant 1.000000e+00 : f32
    %31 = vector.broadcast %cst_13 : f32 to vector<8x32xf32>
    %32 = arith.addf %31, %30 : vector<8x32xf32>
    %33 = arith.divf %31, %32 : vector<8x32xf32>
    %34 = arith.mulf %25, %6 : vector<8x32xf32>
    %35 = arith.mulf %19, %27 : vector<8x32xf32>
    %36 = arith.addf %34, %35 : vector<8x32xf32>
    %37 = math.tanh %36 : vector<8x32xf32>
    %38 = arith.mulf %33, %37 : vector<8x32xf32>
    %c1_i32 = arith.constant 1 : i32
    %39 = arith.index_cast %c1_i32 : i32 to index
    %c0_14 = arith.constant 0 : index
    %c0_15 = arith.constant 0 : index
    %40 = vector.load %arg2[%39, %c0_14, %c0_15] : memref<8x8x128xf32, #tpu.memory_space<vmem>>, vector<1x8x128xf32>
    %41 = vector.shape_cast %40 : vector<1x8x128xf32> to vector<8x128xf32>
    %42 = vector.broadcast %4 : vector<1x128xf32> to vector<8x128xf32>
    %43 = arith.addf %41, %42 : vector<8x128xf32>
    %cst_16 = arith.constant dense<0.000000e+00> : vector<8x128xf32>
    %44 = tpu.matmul %38, %3, %cst_16 {dimension_numbers = #tpu.dot_dimension_numbers<[1], [0], [0], [1], [0, 0, 1, 1], [], []>} : vector<8x32xf32>, vector<32x128xf32>, vector<8x128xf32> -> vector<8x128xf32>
    %45 = arith.addf %43, %44 : vector<8x128xf32>
    %46 = vector.extract_strided_slice %45 {offsets = [0, 0], sizes = [8, 32], strides = [1, 1]} : vector<8x128xf32> to vector<8x32xf32>
    %47 = arith.negf %46 : vector<8x32xf32>
    %48 = math.exp %47 : vector<8x32xf32>
    %cst_17 = arith.constant 1.000000e+00 : f32
    %49 = vector.broadcast %cst_17 : f32 to vector<8x32xf32>
    %50 = arith.addf %49, %48 : vector<8x32xf32>
    %51 = arith.divf %49, %50 : vector<8x32xf32>
    %52 = vector.extract_strided_slice %45 {offsets = [0, 32], sizes = [8, 32], strides = [1, 1]} : vector<8x128xf32> to vector<8x32xf32>
    %53 = arith.negf %52 : vector<8x32xf32>
    %54 = math.exp %53 : vector<8x32xf32>
    %cst_18 = arith.constant 1.000000e+00 : f32
    %55 = vector.broadcast %cst_18 : f32 to vector<8x32xf32>
    %56 = arith.addf %55, %54 : vector<8x32xf32>
    %57 = arith.divf %55, %56 : vector<8x32xf32>
    %58 = vector.extract_strided_slice %45 {offsets = [0, 64], sizes = [8, 32], strides = [1, 1]} : vector<8x128xf32> to vector<8x32xf32>
    %59 = math.tanh %58 : vector<8x32xf32>
    %60 = vector.extract_strided_slice %45 {offsets = [0, 96], sizes = [8, 32], strides = [1, 1]} : vector<8x128xf32> to vector<8x32xf32>
    %61 = arith.negf %60 : vector<8x32xf32>
    %62 = math.exp %61 : vector<8x32xf32>
    %cst_19 = arith.constant 1.000000e+00 : f32
    %63 = vector.broadcast %cst_19 : f32 to vector<8x32xf32>
    %64 = arith.addf %63, %62 : vector<8x32xf32>
    %65 = arith.divf %63, %64 : vector<8x32xf32>
    %66 = arith.mulf %57, %36 : vector<8x32xf32>
    %67 = arith.mulf %51, %59 : vector<8x32xf32>
    %68 = arith.addf %66, %67 : vector<8x32xf32>
    %69 = math.tanh %68 : vector<8x32xf32>
    %70 = arith.mulf %65, %69 : vector<8x32xf32>
    %c2_i32 = arith.constant 2 : i32
    %71 = arith.index_cast %c2_i32 : i32 to index
    %c0_20 = arith.constant 0 : index
    %c0_21 = arith.constant 0 : index
    %72 = vector.load %arg2[%71, %c0_20, %c0_21] : memref<8x8x128xf32, #tpu.memory_space<vmem>>, vector<1x8x128xf32>
    %73 = vector.shape_cast %72 : vector<1x8x128xf32> to vector<8x128xf32>
    %74 = vector.broadcast %4 : vector<1x128xf32> to vector<8x128xf32>
    %75 = arith.addf %73, %74 : vector<8x128xf32>
    %cst_22 = arith.constant dense<0.000000e+00> : vector<8x128xf32>
    %76 = tpu.matmul %70, %3, %cst_22 {dimension_numbers = #tpu.dot_dimension_numbers<[1], [0], [0], [1], [0, 0, 1, 1], [], []>} : vector<8x32xf32>, vector<32x128xf32>, vector<8x128xf32> -> vector<8x128xf32>
    %77 = arith.addf %75, %76 : vector<8x128xf32>
    %78 = vector.extract_strided_slice %77 {offsets = [0, 0], sizes = [8, 32], strides = [1, 1]} : vector<8x128xf32> to vector<8x32xf32>
    %79 = arith.negf %78 : vector<8x32xf32>
    %80 = math.exp %79 : vector<8x32xf32>
    %cst_23 = arith.constant 1.000000e+00 : f32
    %81 = vector.broadcast %cst_23 : f32 to vector<8x32xf32>
    %82 = arith.addf %81, %80 : vector<8x32xf32>
    %83 = arith.divf %81, %82 : vector<8x32xf32>
    %84 = vector.extract_strided_slice %77 {offsets = [0, 32], sizes = [8, 32], strides = [1, 1]} : vector<8x128xf32> to vector<8x32xf32>
    %85 = arith.negf %84 : vector<8x32xf32>
    %86 = math.exp %85 : vector<8x32xf32>
    %cst_24 = arith.constant 1.000000e+00 : f32
    %87 = vector.broadcast %cst_24 : f32 to vector<8x32xf32>
    %88 = arith.addf %87, %86 : vector<8x32xf32>
    %89 = arith.divf %87, %88 : vector<8x32xf32>
    %90 = vector.extract_strided_slice %77 {offsets = [0, 64], sizes = [8, 32], strides = [1, 1]} : vector<8x128xf32> to vector<8x32xf32>
    %91 = math.tanh %90 : vector<8x32xf32>
    %92 = vector.extract_strided_slice %77 {offsets = [0, 96], sizes = [8, 32], strides = [1, 1]} : vector<8x128xf32> to vector<8x32xf32>
    %93 = arith.negf %92 : vector<8x32xf32>
    %94 = math.exp %93 : vector<8x32xf32>
    %cst_25 = arith.constant 1.000000e+00 : f32
    %95 = vector.broadcast %cst_25 : f32 to vector<8x32xf32>
    %96 = arith.addf %95, %94 : vector<8x32xf32>
    %97 = arith.divf %95, %96 : vector<8x32xf32>
    %98 = arith.mulf %89, %68 : vector<8x32xf32>
    %99 = arith.mulf %83, %91 : vector<8x32xf32>
    %100 = arith.addf %98, %99 : vector<8x32xf32>
    %101 = math.tanh %100 : vector<8x32xf32>
    %102 = arith.mulf %97, %101 : vector<8x32xf32>
    %c3_i32 = arith.constant 3 : i32
    %103 = arith.index_cast %c3_i32 : i32 to index
    %c0_26 = arith.constant 0 : index
    %c0_27 = arith.constant 0 : index
    %104 = vector.load %arg2[%103, %c0_26, %c0_27] : memref<8x8x128xf32, #tpu.memory_space<vmem>>, vector<1x8x128xf32>
    %105 = vector.shape_cast %104 : vector<1x8x128xf32> to vector<8x128xf32>
    %106 = vector.broadcast %4 : vector<1x128xf32> to vector<8x128xf32>
    %107 = arith.addf %105, %106 : vector<8x128xf32>
    %cst_28 = arith.constant dense<0.000000e+00> : vector<8x128xf32>
    %108 = tpu.matmul %102, %3, %cst_28 {dimension_numbers = #tpu.dot_dimension_numbers<[1], [0], [0], [1], [0, 0, 1, 1], [], []>} : vector<8x32xf32>, vector<32x128xf32>, vector<8x128xf32> -> vector<8x128xf32>
    %109 = arith.addf %107, %108 : vector<8x128xf32>
    %110 = vector.extract_strided_slice %109 {offsets = [0, 0], sizes = [8, 32], strides = [1, 1]} : vector<8x128xf32> to vector<8x32xf32>
    %111 = arith.negf %110 : vector<8x32xf32>
    %112 = math.exp %111 : vector<8x32xf32>
    %cst_29 = arith.constant 1.000000e+00 : f32
    %113 = vector.broadcast %cst_29 : f32 to vector<8x32xf32>
    %114 = arith.addf %113, %112 : vector<8x32xf32>
    %115 = arith.divf %113, %114 : vector<8x32xf32>
    %116 = vector.extract_strided_slice %109 {offsets = [0, 32], sizes = [8, 32], strides = [1, 1]} : vector<8x128xf32> to vector<8x32xf32>
    %117 = arith.negf %116 : vector<8x32xf32>
    %118 = math.exp %117 : vector<8x32xf32>
    %cst_30 = arith.constant 1.000000e+00 : f32
    %119 = vector.broadcast %cst_30 : f32 to vector<8x32xf32>
    %120 = arith.addf %119, %118 : vector<8x32xf32>
    %121 = arith.divf %119, %120 : vector<8x32xf32>
    %122 = vector.extract_strided_slice %109 {offsets = [0, 64], sizes = [8, 32], strides = [1, 1]} : vector<8x128xf32> to vector<8x32xf32>
    %123 = math.tanh %122 : vector<8x32xf32>
    %124 = vector.extract_strided_slice %109 {offsets = [0, 96], sizes = [8, 32], strides = [1, 1]} : vector<8x128xf32> to vector<8x32xf32>
    %125 = arith.negf %124 : vector<8x32xf32>
    %126 = math.exp %125 : vector<8x32xf32>
    %cst_31 = arith.constant 1.000000e+00 : f32
    %127 = vector.broadcast %cst_31 : f32 to vector<8x32xf32>
    %128 = arith.addf %127, %126 : vector<8x32xf32>
    %129 = arith.divf %127, %128 : vector<8x32xf32>
    %130 = arith.mulf %121, %100 : vector<8x32xf32>
    %131 = arith.mulf %115, %123 : vector<8x32xf32>
    %132 = arith.addf %130, %131 : vector<8x32xf32>
    %133 = math.tanh %132 : vector<8x32xf32>
    %134 = arith.mulf %129, %133 : vector<8x32xf32>
    %c4_i32 = arith.constant 4 : i32
    %135 = arith.index_cast %c4_i32 : i32 to index
    %c0_32 = arith.constant 0 : index
    %c0_33 = arith.constant 0 : index
    %136 = vector.load %arg2[%135, %c0_32, %c0_33] : memref<8x8x128xf32, #tpu.memory_space<vmem>>, vector<1x8x128xf32>
    %137 = vector.shape_cast %136 : vector<1x8x128xf32> to vector<8x128xf32>
    %138 = vector.broadcast %4 : vector<1x128xf32> to vector<8x128xf32>
    %139 = arith.addf %137, %138 : vector<8x128xf32>
    %cst_34 = arith.constant dense<0.000000e+00> : vector<8x128xf32>
    %140 = tpu.matmul %134, %3, %cst_34 {dimension_numbers = #tpu.dot_dimension_numbers<[1], [0], [0], [1], [0, 0, 1, 1], [], []>} : vector<8x32xf32>, vector<32x128xf32>, vector<8x128xf32> -> vector<8x128xf32>
    %141 = arith.addf %139, %140 : vector<8x128xf32>
    %142 = vector.extract_strided_slice %141 {offsets = [0, 0], sizes = [8, 32], strides = [1, 1]} : vector<8x128xf32> to vector<8x32xf32>
    %143 = arith.negf %142 : vector<8x32xf32>
    %144 = math.exp %143 : vector<8x32xf32>
    %cst_35 = arith.constant 1.000000e+00 : f32
    %145 = vector.broadcast %cst_35 : f32 to vector<8x32xf32>
    %146 = arith.addf %145, %144 : vector<8x32xf32>
    %147 = arith.divf %145, %146 : vector<8x32xf32>
    %148 = vector.extract_strided_slice %141 {offsets = [0, 32], sizes = [8, 32], strides = [1, 1]} : vector<8x128xf32> to vector<8x32xf32>
    %149 = arith.negf %148 : vector<8x32xf32>
    %150 = math.exp %149 : vector<8x32xf32>
    %cst_36 = arith.constant 1.000000e+00 : f32
    %151 = vector.broadcast %cst_36 : f32 to vector<8x32xf32>
    %152 = arith.addf %151, %150 : vector<8x32xf32>
    %153 = arith.divf %151, %152 : vector<8x32xf32>
    %154 = vector.extract_strided_slice %141 {offsets = [0, 64], sizes = [8, 32], strides = [1, 1]} : vector<8x128xf32> to vector<8x32xf32>
    %155 = math.tanh %154 : vector<8x32xf32>
    %156 = vector.extract_strided_slice %141 {offsets = [0, 96], sizes = [8, 32], strides = [1, 1]} : vector<8x128xf32> to vector<8x32xf32>
    %157 = arith.negf %156 : vector<8x32xf32>
    %158 = math.exp %157 : vector<8x32xf32>
    %cst_37 = arith.constant 1.000000e+00 : f32
    %159 = vector.broadcast %cst_37 : f32 to vector<8x32xf32>
    %160 = arith.addf %159, %158 : vector<8x32xf32>
    %161 = arith.divf %159, %160 : vector<8x32xf32>
    %162 = arith.mulf %153, %132 : vector<8x32xf32>
    %163 = arith.mulf %147, %155 : vector<8x32xf32>
    %164 = arith.addf %162, %163 : vector<8x32xf32>
    %165 = math.tanh %164 : vector<8x32xf32>
    %166 = arith.mulf %161, %165 : vector<8x32xf32>
    %c5_i32 = arith.constant 5 : i32
    %167 = arith.index_cast %c5_i32 : i32 to index
    %c0_38 = arith.constant 0 : index
    %c0_39 = arith.constant 0 : index
    %168 = vector.load %arg2[%167, %c0_38, %c0_39] : memref<8x8x128xf32, #tpu.memory_space<vmem>>, vector<1x8x128xf32>
    %169 = vector.shape_cast %168 : vector<1x8x128xf32> to vector<8x128xf32>
    %170 = vector.broadcast %4 : vector<1x128xf32> to vector<8x128xf32>
    %171 = arith.addf %169, %170 : vector<8x128xf32>
    %cst_40 = arith.constant dense<0.000000e+00> : vector<8x128xf32>
    %172 = tpu.matmul %166, %3, %cst_40 {dimension_numbers = #tpu.dot_dimension_numbers<[1], [0], [0], [1], [0, 0, 1, 1], [], []>} : vector<8x32xf32>, vector<32x128xf32>, vector<8x128xf32> -> vector<8x128xf32>
    %173 = arith.addf %171, %172 : vector<8x128xf32>
    %174 = vector.extract_strided_slice %173 {offsets = [0, 0], sizes = [8, 32], strides = [1, 1]} : vector<8x128xf32> to vector<8x32xf32>
    %175 = arith.negf %174 : vector<8x32xf32>
    %176 = math.exp %175 : vector<8x32xf32>
    %cst_41 = arith.constant 1.000000e+00 : f32
    %177 = vector.broadcast %cst_41 : f32 to vector<8x32xf32>
    %178 = arith.addf %177, %176 : vector<8x32xf32>
    %179 = arith.divf %177, %178 : vector<8x32xf32>
    %180 = vector.extract_strided_slice %173 {offsets = [0, 32], sizes = [8, 32], strides = [1, 1]} : vector<8x128xf32> to vector<8x32xf32>
    %181 = arith.negf %180 : vector<8x32xf32>
    %182 = math.exp %181 : vector<8x32xf32>
    %cst_42 = arith.constant 1.000000e+00 : f32
    %183 = vector.broadcast %cst_42 : f32 to vector<8x32xf32>
    %184 = arith.addf %183, %182 : vector<8x32xf32>
    %185 = arith.divf %183, %184 : vector<8x32xf32>
    %186 = vector.extract_strided_slice %173 {offsets = [0, 64], sizes = [8, 32], strides = [1, 1]} : vector<8x128xf32> to vector<8x32xf32>
    %187 = math.tanh %186 : vector<8x32xf32>
    %188 = vector.extract_strided_slice %173 {offsets = [0, 96], sizes = [8, 32], strides = [1, 1]} : vector<8x128xf32> to vector<8x32xf32>
    %189 = arith.negf %188 : vector<8x32xf32>
    %190 = math.exp %189 : vector<8x32xf32>
    %cst_43 = arith.constant 1.000000e+00 : f32
    %191 = vector.broadcast %cst_43 : f32 to vector<8x32xf32>
    %192 = arith.addf %191, %190 : vector<8x32xf32>
    %193 = arith.divf %191, %192 : vector<8x32xf32>
    %194 = arith.mulf %185, %164 : vector<8x32xf32>
    %195 = arith.mulf %179, %187 : vector<8x32xf32>
    %196 = arith.addf %194, %195 : vector<8x32xf32>
    %197 = math.tanh %196 : vector<8x32xf32>
    %198 = arith.mulf %193, %197 : vector<8x32xf32>
    %c6_i32 = arith.constant 6 : i32
    %199 = arith.index_cast %c6_i32 : i32 to index
    %c0_44 = arith.constant 0 : index
    %c0_45 = arith.constant 0 : index
    %200 = vector.load %arg2[%199, %c0_44, %c0_45] : memref<8x8x128xf32, #tpu.memory_space<vmem>>, vector<1x8x128xf32>
    %201 = vector.shape_cast %200 : vector<1x8x128xf32> to vector<8x128xf32>
    %202 = vector.broadcast %4 : vector<1x128xf32> to vector<8x128xf32>
    %203 = arith.addf %201, %202 : vector<8x128xf32>
    %cst_46 = arith.constant dense<0.000000e+00> : vector<8x128xf32>
    %204 = tpu.matmul %198, %3, %cst_46 {dimension_numbers = #tpu.dot_dimension_numbers<[1], [0], [0], [1], [0, 0, 1, 1], [], []>} : vector<8x32xf32>, vector<32x128xf32>, vector<8x128xf32> -> vector<8x128xf32>
    %205 = arith.addf %203, %204 : vector<8x128xf32>
    %206 = vector.extract_strided_slice %205 {offsets = [0, 0], sizes = [8, 32], strides = [1, 1]} : vector<8x128xf32> to vector<8x32xf32>
    %207 = arith.negf %206 : vector<8x32xf32>
    %208 = math.exp %207 : vector<8x32xf32>
    %cst_47 = arith.constant 1.000000e+00 : f32
    %209 = vector.broadcast %cst_47 : f32 to vector<8x32xf32>
    %210 = arith.addf %209, %208 : vector<8x32xf32>
    %211 = arith.divf %209, %210 : vector<8x32xf32>
    %212 = vector.extract_strided_slice %205 {offsets = [0, 32], sizes = [8, 32], strides = [1, 1]} : vector<8x128xf32> to vector<8x32xf32>
    %213 = arith.negf %212 : vector<8x32xf32>
    %214 = math.exp %213 : vector<8x32xf32>
    %cst_48 = arith.constant 1.000000e+00 : f32
    %215 = vector.broadcast %cst_48 : f32 to vector<8x32xf32>
    %216 = arith.addf %215, %214 : vector<8x32xf32>
    %217 = arith.divf %215, %216 : vector<8x32xf32>
    %218 = vector.extract_strided_slice %205 {offsets = [0, 64], sizes = [8, 32], strides = [1, 1]} : vector<8x128xf32> to vector<8x32xf32>
    %219 = math.tanh %218 : vector<8x32xf32>
    %220 = vector.extract_strided_slice %205 {offsets = [0, 96], sizes = [8, 32], strides = [1, 1]} : vector<8x128xf32> to vector<8x32xf32>
    %221 = arith.negf %220 : vector<8x32xf32>
    %222 = math.exp %221 : vector<8x32xf32>
    %cst_49 = arith.constant 1.000000e+00 : f32
    %223 = vector.broadcast %cst_49 : f32 to vector<8x32xf32>
    %224 = arith.addf %223, %222 : vector<8x32xf32>
    %225 = arith.divf %223, %224 : vector<8x32xf32>
    %226 = arith.mulf %217, %196 : vector<8x32xf32>
    %227 = arith.mulf %211, %219 : vector<8x32xf32>
    %228 = arith.addf %226, %227 : vector<8x32xf32>
    %229 = math.tanh %228 : vector<8x32xf32>
    %230 = arith.mulf %225, %229 : vector<8x32xf32>
    %c7_i32 = arith.constant 7 : i32
    %231 = arith.index_cast %c7_i32 : i32 to index
    %c0_50 = arith.constant 0 : index
    %c0_51 = arith.constant 0 : index
    %232 = vector.load %arg2[%231, %c0_50, %c0_51] : memref<8x8x128xf32, #tpu.memory_space<vmem>>, vector<1x8x128xf32>
    %233 = vector.shape_cast %232 : vector<1x8x128xf32> to vector<8x128xf32>
    %234 = vector.broadcast %4 : vector<1x128xf32> to vector<8x128xf32>
    %235 = arith.addf %233, %234 : vector<8x128xf32>
    %cst_52 = arith.constant dense<0.000000e+00> : vector<8x128xf32>
    %236 = tpu.matmul %230, %3, %cst_52 {dimension_numbers = #tpu.dot_dimension_numbers<[1], [0], [0], [1], [0, 0, 1, 1], [], []>} : vector<8x32xf32>, vector<32x128xf32>, vector<8x128xf32> -> vector<8x128xf32>
    %237 = arith.addf %235, %236 : vector<8x128xf32>
    %238 = vector.extract_strided_slice %237 {offsets = [0, 0], sizes = [8, 32], strides = [1, 1]} : vector<8x128xf32> to vector<8x32xf32>
    %239 = arith.negf %238 : vector<8x32xf32>
    %240 = math.exp %239 : vector<8x32xf32>
    %cst_53 = arith.constant 1.000000e+00 : f32
    %241 = vector.broadcast %cst_53 : f32 to vector<8x32xf32>
    %242 = arith.addf %241, %240 : vector<8x32xf32>
    %243 = arith.divf %241, %242 : vector<8x32xf32>
    %244 = vector.extract_strided_slice %237 {offsets = [0, 32], sizes = [8, 32], strides = [1, 1]} : vector<8x128xf32> to vector<8x32xf32>
    %245 = arith.negf %244 : vector<8x32xf32>
    %246 = math.exp %245 : vector<8x32xf32>
    %cst_54 = arith.constant 1.000000e+00 : f32
    %247 = vector.broadcast %cst_54 : f32 to vector<8x32xf32>
    %248 = arith.addf %247, %246 : vector<8x32xf32>
    %249 = arith.divf %247, %248 : vector<8x32xf32>
    %250 = vector.extract_strided_slice %237 {offsets = [0, 64], sizes = [8, 32], strides = [1, 1]} : vector<8x128xf32> to vector<8x32xf32>
    %251 = math.tanh %250 : vector<8x32xf32>
    %252 = vector.extract_strided_slice %237 {offsets = [0, 96], sizes = [8, 32], strides = [1, 1]} : vector<8x128xf32> to vector<8x32xf32>
    %253 = arith.negf %252 : vector<8x32xf32>
    %254 = math.exp %253 : vector<8x32xf32>
    %cst_55 = arith.constant 1.000000e+00 : f32
    %255 = vector.broadcast %cst_55 : f32 to vector<8x32xf32>
    %256 = arith.addf %255, %254 : vector<8x32xf32>
    %257 = arith.divf %255, %256 : vector<8x32xf32>
    %258 = arith.mulf %249, %228 : vector<8x32xf32>
    %259 = arith.mulf %243, %251 : vector<8x32xf32>
    %260 = arith.addf %258, %259 : vector<8x32xf32>
    %261 = math.tanh %260 : vector<8x32xf32>
    %262 = arith.mulf %257, %261 : vector<8x32xf32>
    %c8_i32 = arith.constant 8 : i32
    %c0_56 = arith.constant 0 : index
    %c0_57 = arith.constant 0 : index
    %263 = vector.load %arg6[%c0_56, %c0_57] : memref<8x32xf32, #tpu.memory_space<vmem>>, vector<8x32xf32>
    tpu.vector_store %arg6[%c0_56, %c0_57], %262 {strides = array<i32>} : memref<8x32xf32, #tpu.memory_space<vmem>>, vector<8x32xf32>,
    %c0_58 = arith.constant 0 : index
    %c0_59 = arith.constant 0 : index
    %264 = vector.load %arg7[%c0_58, %c0_59] : memref<8x32xf32, #tpu.memory_space<vmem>>, vector<8x32xf32>
    tpu.vector_store %arg7[%c0_58, %c0_59], %260 {strides = array<i32>} : memref<8x32xf32, #tpu.memory_space<vmem>>, vector<8x32xf32>,
    %c0_i32_60 = arith.constant 0 : i32
    %265 = arith.cmpi eq, %arg1, %c0_i32_60 : i32
    %266 = arith.extui %265 : i1 to i32
    %c0_i32_61 = arith.constant 0 : i32
    %267 = arith.cmpi ne, %266, %c0_i32_61 : i32
    scf.if %267 {
      %c0_62 = arith.constant 0 : index
      %c0_63 = arith.constant 0 : index
      %268 = vector.load %arg5[%c0_62, %c0_63] : memref<8x32xf32, #tpu.memory_space<vmem>>, vector<8x32xf32>
      tpu.vector_store %arg5[%c0_62, %c0_63], %262 {strides = array<i32>} : memref<8x32xf32, #tpu.memory_space<vmem>>, vector<8x32xf32>,
    } else {
    }
    return
  }
  func.func @transform_0(%arg0: i32, %arg1: i32) -> (i32, i32, i32) {
    %c0_i32 = arith.constant 0 : i32
    %c0_i32_0 = arith.constant 0 : i32
    return %arg1, %arg0, %c0_i32 : i32, i32, i32
  }
  func.func @transform_1(%arg0: i32, %arg1: i32) -> (i32, i32) {
    %c0_i32 = arith.constant 0 : i32
    %c0_i32_0 = arith.constant 0 : i32
    %c0_i32_1 = arith.constant 0 : i32
    return %c0_i32, %c0_i32_0 : i32, i32
  }
  func.func @transform_2(%arg0: i32, %arg1: i32) -> (i32, i32) {
    %c0_i32 = arith.constant 0 : i32
    %c0_i32_0 = arith.constant 0 : i32
    %c0_i32_1 = arith.constant 0 : i32
    return %c0_i32, %c0_i32_0 : i32, i32
  }
  func.func @transform_3(%arg0: i32, %arg1: i32) -> (i32, i32) {
    %c0_i32 = arith.constant 0 : i32
    %c0_i32_0 = arith.constant 0 : i32
    return %arg0, %c0_i32 : i32, i32
  }
}

</mosaic_0001>

<bundles_post_ra>
// kernel: tpu_custom_call.1
= control target key start
LH: loop header
LB: loop body
LE: loop exit
PB: predicated region body
PF: predicated region fallthrough
CT: control target
= control target key end

     0   :  { %8 = vsyncpa [#allocation5], 0  ;;  %s1392_s0 = inlined_call_operand.hbm [shape: f32[8,8,128], index: 0, kind: input, shape index: {}]   ;;  %s1393_s1 = inlined_call_operand.hbm [shape: f32[32,128], index: 1, kind: input, shape index: {}]   ;;  %s1394_s2 = inlined_call_operand.vmem [shape: f32[1,128], index: 2, kind: input, shape index: {}]   ;;  %s1395_s3 = inlined_call_operand.hbm [shape: f32[8,32], index: 3, kind: output, shape index: {}]  }
   0x1   :  { %9 = vsyncpa [#allocation8], 0 }
   0x2   :  { %10 = vsyncpa [#allocation6], 0  ;;  %s1204_s12 = smov [#allocation4]  }
   0x3   :  { %s16_s13 = sshll.u32 %s1204_s12, 4  ;;  %s17_s13 = int_to_ptr.vmem [resolvable:$true] %s16_s13 }
   0x4   :  { %s1146_s14 = scalar_lea.vmem %s17_s13, 1024  ;;  %p1151_p1 = scmp.lt.s32.totalorder %s17_s13, %s17_s13 }
   0x5   :  { %p1147_p0 = scmp.ne.s32.totalorder %s17_s13, %s1146_s14  ;;  %p1152_p2 = scmp.lt.s32.totalorder %s1146_s14, %s1146_s14 }
   0x7   :  { %p1153_p3 = por %p1152_p2, %p1151_p1 }
   0x9   :  { %p1154_p4 = pnand %p1153_p3, %p1147_p0 }
   0xb   :  { %1157 = shalt.err (!%p1154_p4)
}
   0xc   :  { %s1205_s15 = smov 128   ;;  %s1206_s16 = smov 8  }
   0xd   :  { %22 = dma.hbm_to_vmem [thread:$0]  %s1392_s0, 1024, %s17_s13, [#allocation5], %s1205_s15, %s1205_s15, %s1206_s16  }
   0xe   :  { %s1207_s19 = smov [#allocation7]  }
   0xf   :  { %s28_s20 = sshll.u32 %s1207_s19, 4  ;;  %s29_s20 = int_to_ptr.vmem [resolvable:$true] %s28_s20 }
  0x10   :  { %s1166_s21 = scalar_lea.vmem %s29_s20, 512  ;;  %p1171_p6 = scmp.lt.s32.totalorder %s29_s20, %s29_s20 }
  0x11   :  { %p1167_p5 = scmp.ne.s32.totalorder %s29_s20, %s1166_s21  ;;  %p1172_p7 = scmp.lt.s32.totalorder %s1166_s21, %s1166_s21 }
  0x13   :  { %p1173_p8 = por %p1172_p7, %p1171_p6 }
  0x15   :  { %p1174_p9 = pnand %p1173_p8, %p1167_p5 }
  0x17   :  { %1177 = shalt.err (!%p1174_p9)
}
  0x18   :  { %34 = dma.hbm_to_vmem [thread:$0]  %s1393_s1, 512, %s29_s20, [#allocation8], %s1205_s15, %s1205_s15, %s1206_s16  }
  0x19   :  { %1198 = dma.done.wait [#allocation5], 1024  }
  0x1a   :  { %1199 = vsyncadd [#allocation5], 4294966272 }
  0x1b   :  { %1200 = dma.done.wait [#allocation8], 512  }
  0x1c   :  { %1201 = vsyncadd [#allocation8], 4294966784  ;;  %vm47_vm0 = vcmask 261120   ;;  %v1208_v0 = vmov 0.0   ;;  %vm1209_vm1 = vmmov 0   ;;  %v1250_v1 = vld [vmem:[#allocation7 + $0x18] sm:$0xff] }
  0x1d   :  { %976 = vmatprep.subr.mxu0 %v1208_v0  ;;  %984 = vmatprep.mubr.msk.f32.mxu0 %vm1209_vm1, %v1208_v0  ;;  %48 = vst.msk [vmem:[#allocation2] sm:$0xff] %vm47_vm0, %v1208_v0  ;;  %49 = vst.msk [vmem:[#allocation3] sm:$0xff] %vm47_vm0, %v1208_v0  ;;  %v1252_v2 = vld [vmem:[#allocation7 + $0x10] sm:$0xff]  ;;  %v1257_v3 = vld [vmem:[#allocation7 + $0x8] sm:$0xff]  ;;  %s1210_s24 = smov 64   ;;  %s1211_s25 = smov 32  }
  0x1e   :  { %987 = vmatprep.subr.mxu1 %v1208_v0  ;;  %995 = vmatprep.mubr.msk.f32.mxu1 %vm1209_vm1, %v1208_v0  ;;  %v1263_v4 = vld [vmem:[#allocation7] sm:$0xff]  ;;  %v1288_v6 = vld [vmem:[%s1394_s2] ss:$0 sm:$0xff]  ;;  %v169_v28 = vld [vmem:[#allocation4 + $0x8] sm:$0xff]  ;;  %s1212_s2 = smov 96   ;;  %s1213_s26 = smov [#allocation9]  }
  0x1f   :  { %977 = vmatpush3.msra.mxu0 %v1250_v1  ;;  %988 = vmatpush3.msra.mxu1 %v1250_v1  ;;  %v57_v7 = vld [vmem:[#allocation4] sm:$0xff]  ;;  %v170_v29 = vadd.f32 %v1288_v6, %v169_v28  ;;  %v272_v47 = vld [vmem:[#allocation4 + $0x10] sm:$0xff]  ;;  %s909_s27 = sshll.u32 %s1213_s26, 4  ;;  %s910_s27 = int_to_ptr.vmem [resolvable:$true] %s909_s27 }
  0x20   :  { %978 = vmatprep.subr.mxu0 %v1208_v0  ;;  %989 = vmatprep.subr.mxu1 %v1208_v0  ;;  %v64_v8 = vadd.f32 %v1288_v6, %v57_v7  ;;  %v273_v48 = vadd.f32 %v1288_v6, %v272_v47  ;;  %s1178_s28 = scalar_lea.vmem %s910_s27, 128  ;;  %p1183_p11 = scmp.lt.s32.totalorder %s910_s27, %s910_s27 }
  0x21   :  { %979 = vmatpush3.msra.mxu0 %v1252_v2  ;;  %990 = vmatpush3.msra.mxu1 %v1252_v2  ;;  %p1179_p10 = scmp.ne.s32.totalorder %s910_s27, %s1178_s28  ;;  %p1184_p12 = scmp.lt.s32.totalorder %s1178_s28, %s1178_s28 }
  0x22   :  { %980 = vmatprep.subr.mxu0 %v1208_v0  ;;  %991 = vmatprep.subr.mxu1 %v1208_v0 }
  0x23   :  { %981 = vmatpush3.msra.mxu0 %v1257_v3  ;;  %992 = vmatpush3.msra.mxu1 %v1257_v3  ;;  %p1185_p13 = por %p1184_p12, %p1183_p11 }
  0x24   :  { %v55_v5 = vld [vmem:[#allocation2] sm:$0xff]  ;;  %982 = vmatprep.subr.mxu0 %v1208_v0  ;;  %993 = vmatprep.subr.mxu1 %v1208_v0  ;;  %v56_v13 = vld [vmem:[#allocation3] sm:$0xff] }
  0x25   :  { %983 = vmatpush3.msra.mxu0 %v1263_v4  ;;  %994 = vmatpush3.msra.mxu1 %v1263_v4  ;;  %p1186_p0 = pnand %p1185_p13, %p1179_p10 }
  0x26   :  { %985 = vmatmul.mubr.msk.f32.vlgmr.msra.gmra.mxu0 %vm47_vm0, %v55_v5  ;;  %998 = vmatprep.subr.mxu0 %v1208_v0 }
  0x27   :  { %999 = vmatpush3.msra.mxu0 %v1250_v1  ;;  %1006 = vmatprep.mubr.msk.f32.mxu0 %vm1209_vm1, %v1208_v0 }
  0x28   :  { %1000 = vmatprep.subr.mxu0 %v1208_v0  ;;  %1009 = vmatprep.subr.mxu1 %v1208_v0 }
  0x29   :  { %1001 = vmatpush3.msra.mxu0 %v1252_v2 }
  0x2a   :  { %1002 = vmatprep.subr.mxu0 %v1208_v0 }
  0x2b   :  { %1003 = vmatpush3.msra.mxu0 %v1257_v3 }
  0x2c   :  { %1004 = vmatprep.subr.mxu0 %v1208_v0 }
  0x2d   :  { %1005 = vmatpush3.msra.mxu0 %v1263_v4 }
  0x2e   :  { %1020 = vmatprep.subr.mxu0 %v1208_v0 }
  0xe6   :  { %v135_v9 = vpop.f32.mrf.mxu0 }
  0xe7   :  { %v139_v10 = vadd.f32 %v135_v9, %v64_v8  ;;  %v375_v8 = vld [vmem:[#allocation4 + $0x18] sm:$0xff] }
  0xe8   :  { %v986_v11 = vpop.f32.mrf.mxu0  ;;  %v376_v9 = vadd.f32 %v1288_v6, %v375_v8 }
  0xe9   :  { %1074 = vtanh.f32 %v139_v10  ;;  %v921_v14 = vmul.f32 -1.442695, %v139_v10 }
  0xeb   :  { %1076 = vpow2.f32 %v921_v14 }
  0xf6   :  { %v1075_v12 = vpop.eup %1074 }
  0xf7   :  { %153 = vrot.lane.b32.xlu0 %v1075_v12, %s1210_s24 }
  0xf8   :  { %v1077_v15 = vpop.eup %1076 }
  0xf9   :  { %v143_v16 = vadd.f32 1.0, %v1077_v15 }
  0xfb   :  { %148 = vrot.lane.b32.xlu0 %v56_v13, %s1211_s25  ;;  %1078 = vrcp.f32 %v143_v16 }
 0x108   :  { %v1079_v17 = vpop.eup %1078 }
 0x169   :  { %v154_v18 = vpop.permute.xlu0 %153 }
 0x16a   :  { %v156_v19 = vmul.f32 %v1079_v17, %v154_v18 }
 0x16c   :  { %158 = vrot.lane.b32.xlu1 %v156_v19, %s1211_s25 }
 0x16d   :  { %v149_v20 = vpop.permute.xlu0 %148 }
 0x16e   :  { %v151_v21 = vmul.f32 %v1079_v17, %v149_v20 }
 0x1de   :  { %v159_v22 = vpop.permute.xlu1 %158 }
 0x1df   :  { %v161_v23 = vadd.f32 %v159_v22, %v151_v21 }
 0x1e1   :  { %1080 = vtanh.f32 %v161_v23 }
 0x1ee   :  { %v1081_v24 = vpop.eup %1080 }
 0x1ef   :  { %164 = vrot.lane.b32.xlu1 %v1081_v24, %s1210_s24 }
 0x261   :  { %v165_v25 = vpop.permute.xlu1 %164 }
 0x262   :  { %v167_v26 = vmul.f32 %v1079_v17, %v165_v25 }
 0x264   :  { %172 = vrot.lane.b32.xlu0 %v167_v26, %s1211_s25 }
 0x2d6   :  { %v173_v27 = vpop.permute.xlu0 %172 }
 0x2d7   :  { %996 = vmatmul.mubr.msk.f32.vlgmr.msra.gmra.mxu1 %vm47_vm0, %v173_v27  ;;  %v478_v27 = vld [vmem:[#allocation4 + $0x20] sm:$0xff] }
 0x2d8   :  { %1010 = vmatpush3.msra.mxu1 %v1250_v1  ;;  %1017 = vmatprep.mubr.msk.f32.mxu1 %vm1209_vm1, %v1208_v0  ;;  %v479_v28 = vadd.f32 %v1288_v6, %v478_v27 }
 0x2d9   :  { %1011 = vmatprep.subr.mxu1 %v1208_v0 }
 0x2da   :  { %1012 = vmatpush3.msra.mxu1 %v1252_v2 }
 0x2db   :  { %1013 = vmatprep.subr.mxu1 %v1208_v0 }
 0x2dc   :  { %1014 = vmatpush3.msra.mxu1 %v1257_v3 }
 0x2dd   :  { %1015 = vmatprep.subr.mxu1 %v1208_v0 }
 0x2de   :  { %1016 = vmatpush3.msra.mxu1 %v1263_v4 }
 0x2df   :  { %1031 = vmatprep.subr.mxu1 %v1208_v0 }
 0x397   :  { %v242_v30 = vpop.f32.mrf.mxu1 }
 0x398   :  { %v246_v31 = vadd.f32 %v242_v30, %v170_v29 }
 0x399   :  { %v997_v32 = vpop.f32.mrf.mxu1 }
 0x39a   :  { %1082 = vtanh.f32 %v246_v31  ;;  %v923_v34 = vmul.f32 -1.442695, %v246_v31 }
 0x39c   :  { %1084 = vpow2.f32 %v923_v34 }
 0x3a7   :  { %v1083_v33 = vpop.eup %1082 }
 0x3a8   :  { %256 = vrot.lane.b32.xlu1 %v1083_v33, %s1210_s24 }
 0x3a9   :  { %v1085_v35 = vpop.eup %1084 }
 0x3aa   :  { %v250_v36 = vadd.f32 1.0, %v1085_v35 }
 0x3ac   :  { %1086 = vrcp.f32 %v250_v36 }
 0x3b9   :  { %v1087_v37 = vpop.eup %1086 }
 0x3ba   :  { %v254_v40 = vmul.f32 %v1087_v37, %v161_v23 }
 0x41a   :  { %v257_v38 = vpop.permute.xlu1 %256 }
 0x41b   :  { %v259_v39 = vmul.f32 %v1087_v37, %v257_v38 }
 0x41d   :  { %261 = vrot.lane.b32.xlu0 %v259_v39, %s1211_s25 }
 0x48f   :  { %v262_v41 = vpop.permute.xlu0 %261 }
 0x490   :  { %v264_v42 = vadd.f32 %v262_v41, %v254_v40 }
 0x492   :  { %1088 = vtanh.f32 %v264_v42 }
 0x49f   :  { %v1089_v43 = vpop.eup %1088 }
 0x4a0   :  { %267 = vrot.lane.b32.xlu1 %v1089_v43, %s1210_s24 }
 0x512   :  { %v268_v44 = vpop.permute.xlu1 %267 }
 0x513   :  { %v270_v45 = vmul.f32 %v1087_v37, %v268_v44 }
 0x515   :  { %275 = vrot.lane.b32.xlu0 %v270_v45, %s1211_s25 }
 0x587   :  { %v276_v46 = vpop.permute.xlu0 %275 }
 0x588   :  { %1007 = vmatmul.mubr.msk.f32.vlgmr.msra.gmra.mxu0 %vm47_vm0, %v276_v46  ;;  %v581_v46 = vld [vmem:[#allocation4 + $0x28] sm:$0xff] }
 0x589   :  { %1021 = vmatpush3.msra.mxu0 %v1250_v1  ;;  %1028 = vmatprep.mubr.msk.f32.mxu0 %vm1209_vm1, %v1208_v0  ;;  %v582_v47 = vadd.f32 %v1288_v6, %v581_v46 }
 0x58a   :  { %1022 = vmatprep.subr.mxu0 %v1208_v0 }
 0x58b   :  { %1023 = vmatpush3.msra.mxu0 %v1252_v2 }
 0x58c   :  { %1024 = vmatprep.subr.mxu0 %v1208_v0 }
 0x58d   :  { %1025 = vmatpush3.msra.mxu0 %v1257_v3 }
 0x58e   :  { %1026 = vmatprep.subr.mxu0 %v1208_v0 }
 0x58f   :  { %1027 = vmatpush3.msra.mxu0 %v1263_v4 }
 0x590   :  { %1042 = vmatprep.subr.mxu0 %v1208_v0 }
 0x648   :  { %v345_v49 = vpop.f32.mrf.mxu0 }
 0x649   :  { %v349_v50 = vadd.f32 %v345_v49, %v273_v48 }
 0x64a   :  { %v1008_v51 = vpop.f32.mrf.mxu0 }
 0x64b   :  { %1090 = vtanh.f32 %v349_v50  ;;  %v925_v53 = vmul.f32 -1.442695, %v349_v50 }
 0x64d   :  { %1092 = vpow2.f32 %v925_v53 }
 0x658   :  { %v1091_v52 = vpop.eup %1090 }
 0x659   :  { %359 = vrot.lane.b32.xlu1 %v1091_v52, %s1210_s24 }
 0x65a   :  { %v1093_v54 = vpop.eup %1092 }
 0x65b   :  { %v353_v55 = vadd.f32 1.0, %v1093_v54 }
 0x65d   :  { %1094 = vrcp.f32 %v353_v55 }
 0x66a   :  { %v1095_v56 = vpop.eup %1094 }
 0x66b   :  { %v357_v59 = vmul.f32 %v1095_v56, %v264_v42 }
 0x6cb   :  { %v360_v57 = vpop.permute.xlu1 %359 }
 0x6cc   :  { %v362_v58 = vmul.f32 %v1095_v56, %v360_v57 }
 0x6ce   :  { %364 = vrot.lane.b32.xlu0 %v362_v58, %s1211_s25 }
 0x740   :  { %v365_v60 = vpop.permute.xlu0 %364 }
 0x741   :  { %v367_v61 = vadd.f32 %v365_v60, %v357_v59  ;;  %v684_v60 = vld [vmem:[#allocation4 + $0x30] sm:$0xff] }
 0x743   :  { %1096 = vtanh.f32 %v367_v61 }
 0x750   :  { %v1097_v62 = vpop.eup %1096 }
 0x751   :  { %370 = vrot.lane.b32.xlu1 %v1097_v62, %s1210_s24 }
 0x7c3   :  { %v371_v63 = vpop.permute.xlu1 %370 }
 0x7c4   :  { %v373_v5 = vmul.f32 %v1095_v56, %v371_v63 }
 0x7c6   :  { %378 = vrot.lane.b32.xlu0 %v373_v5, %s1211_s25 }
 0x838   :  { %v379_v7 = vpop.permute.xlu0 %378 }
 0x839   :  { %1018 = vmatmul.mubr.msk.f32.vlgmr.msra.gmra.mxu1 %vm47_vm0, %v379_v7 }
 0x83a   :  { %1032 = vmatpush3.msra.mxu1 %v1250_v1  ;;  %1039 = vmatprep.mubr.msk.f32.mxu1 %vm1209_vm1, %v1208_v0 }
 0x83b   :  { %1033 = vmatprep.subr.mxu1 %v1208_v0 }
 0x83c   :  { %1034 = vmatpush3.msra.mxu1 %v1252_v2 }
 0x83d   :  { %1035 = vmatprep.subr.mxu1 %v1208_v0 }
 0x83e   :  { %1036 = vmatpush3.msra.mxu1 %v1257_v3 }
 0x83f   :  { %1037 = vmatprep.subr.mxu1 %v1208_v0 }
 0x840   :  { %1038 = vmatpush3.msra.mxu1 %v1263_v4 }
 0x841   :  { %1053 = vmatprep.subr.mxu1 %v1208_v0 }
 0x8f9   :  { %v448_v10 = vpop.f32.mrf.mxu1 }
 0x8fa   :  { %v452_v11 = vadd.f32 %v448_v10, %v376_v9 }
 0x8fb   :  { %v1019_v12 = vpop.f32.mrf.mxu1 }
 0x8fc   :  { %1098 = vtanh.f32 %v452_v11  ;;  %v927_v14 = vmul.f32 -1.442695, %v452_v11 }
 0x8fe   :  { %1100 = vpow2.f32 %v927_v14 }
 0x909   :  { %v1099_v13 = vpop.eup %1098 }
 0x90a   :  { %462 = vrot.lane.b32.xlu1 %v1099_v13, %s1210_s24 }
 0x90b   :  { %v1101_v15 = vpop.eup %1100 }
 0x90c   :  { %v456_v16 = vadd.f32 1.0, %v1101_v15 }
 0x90e   :  { %1102 = vrcp.f32 %v456_v16 }
 0x91b   :  { %v1103_v17 = vpop.eup %1102 }
 0x91c   :  { %v460_v20 = vmul.f32 %v1103_v17, %v367_v61  ;;  %v685_v61 = vadd.f32 %v1288_v6, %v684_v60 }
 0x97c   :  { %v463_v18 = vpop.permute.xlu1 %462 }
 0x97d   :  { %v465_v19 = vmul.f32 %v1103_v17, %v463_v18 }
 0x97f   :  { %467 = vrot.lane.b32.xlu0 %v465_v19, %s1211_s25 }
 0x9f1   :  { %v468_v21 = vpop.permute.xlu0 %467 }
 0x9f2   :  { %v470_v22 = vadd.f32 %v468_v21, %v460_v20  ;;  %v787_v21 = vld [vmem:[#allocation4 + $0x38] sm:$0xff] }
 0x9f4   :  { %1104 = vtanh.f32 %v470_v22 }
 0xa01   :  { %v1105_v23 = vpop.eup %1104 }
 0xa02   :  { %473 = vrot.lane.b32.xlu1 %v1105_v23, %s1210_s24 }
 0xa74   :  { %v474_v24 = vpop.permute.xlu1 %473 }
 0xa75   :  { %v476_v25 = vmul.f32 %v1103_v17, %v474_v24 }
 0xa77   :  { %481 = vrot.lane.b32.xlu0 %v476_v25, %s1211_s25 }
 0xae9   :  { %v482_v26 = vpop.permute.xlu0 %481 }
 0xaea   :  { %1029 = vmatmul.mubr.msk.f32.vlgmr.msra.gmra.mxu0 %vm47_vm0, %v482_v26 }
 0xaeb   :  { %1043 = vmatpush3.msra.mxu0 %v1250_v1  ;;  %1050 = vmatprep.mubr.msk.f32.mxu0 %vm1209_vm1, %v1208_v0 }
 0xaec   :  { %1044 = vmatprep.subr.mxu0 %v1208_v0 }
 0xaed   :  { %1045 = vmatpush3.msra.mxu0 %v1252_v2 }
 0xaee   :  { %1046 = vmatprep.subr.mxu0 %v1208_v0 }
 0xaef   :  { %1047 = vmatpush3.msra.mxu0 %v1257_v3 }
 0xaf0   :  { %1048 = vmatprep.subr.mxu0 %v1208_v0 }
 0xaf1   :  { %1049 = vmatpush3.msra.mxu0 %v1263_v4 }
 0xbaa   :  { %v551_v29 = vpop.f32.mrf.mxu0 }
 0xbab   :  { %v555_v30 = vadd.f32 %v551_v29, %v479_v28 }
 0xbac   :  { %v1030_v31 = vpop.f32.mrf.mxu0 }
 0xbad   :  { %1106 = vtanh.f32 %v555_v30  ;;  %v929_v33 = vmul.f32 -1.442695, %v555_v30 }
 0xbaf   :  { %1108 = vpow2.f32 %v929_v33 }
 0xbba   :  { %v1107_v32 = vpop.eup %1106 }
 0xbbb   :  { %565 = vrot.lane.b32.xlu1 %v1107_v32, %s1210_s24 }
 0xbbc   :  { %v1109_v34 = vpop.eup %1108 }
 0xbbd   :  { %v559_v35 = vadd.f32 1.0, %v1109_v34 }
 0xbbf   :  { %1110 = vrcp.f32 %v559_v35 }
 0xbcc   :  { %v1111_v36 = vpop.eup %1110 }
 0xbcd   :  { %v563_v39 = vmul.f32 %v1111_v36, %v470_v22  ;;  %v788_v22 = vadd.f32 %v1288_v6, %v787_v21 }
 0xc2d   :  { %v566_v37 = vpop.permute.xlu1 %565 }
 0xc2e   :  { %v568_v38 = vmul.f32 %v1111_v36, %v566_v37 }
 0xc30   :  { %570 = vrot.lane.b32.xlu0 %v568_v38, %s1211_s25 }
 0xca2   :  { %v571_v40 = vpop.permute.xlu0 %570 }
 0xca3   :  { %v573_v41 = vadd.f32 %v571_v40, %v563_v39 }
 0xca5   :  { %1112 = vtanh.f32 %v573_v41 }
 0xcb2   :  { %v1113_v42 = vpop.eup %1112 }
 0xcb3   :  { %576 = vrot.lane.b32.xlu1 %v1113_v42, %s1210_s24 }
 0xd25   :  { %v577_v43 = vpop.permute.xlu1 %576 }
 0xd26   :  { %v579_v44 = vmul.f32 %v1111_v36, %v577_v43 }
 0xd28   :  { %584 = vrot.lane.b32.xlu0 %v579_v44, %s1211_s25 }
 0xd9a   :  { %v585_v45 = vpop.permute.xlu0 %584 }
 0xd9b   :  { %1040 = vmatmul.mubr.msk.f32.vlgmr.msra.gmra.mxu1 %vm47_vm0, %v585_v45 }
 0xd9c   :  { %1054 = vmatpush3.msra.mxu1 %v1250_v1  ;;  %1061 = vmatprep.mubr.msk.f32.mxu1 %vm1209_vm1, %v1208_v0 }
 0xd9d   :  { %1055 = vmatprep.subr.mxu1 %v1208_v0 }
 0xd9e   :  { %1056 = vmatpush3.msra.mxu1 %v1252_v2 }
 0xd9f   :  { %1057 = vmatprep.subr.mxu1 %v1208_v0 }
 0xda0   :  { %1058 = vmatpush3.msra.mxu1 %v1257_v3 }
 0xda1   :  { %1059 = vmatprep.subr.mxu1 %v1208_v0 }
 0xda2   :  { %1060 = vmatpush3.msra.mxu1 %v1263_v4 }
 0xe5b   :  { %v654_v48 = vpop.f32.mrf.mxu1 }
 0xe5c   :  { %v658_v1 = vadd.f32 %v654_v48, %v582_v47 }
 0xe5d   :  { %v1041_v49 = vpop.f32.mrf.mxu1 }
 0xe5e   :  { %1114 = vtanh.f32 %v658_v1  ;;  %v931_v51 = vmul.f32 -1.442695, %v658_v1 }
 0xe60   :  { %1116 = vpow2.f32 %v931_v51 }
 0xe6b   :  { %v1115_v50 = vpop.eup %1114 }
 0xe6c   :  { %668 = vrot.lane.b32.xlu1 %v1115_v50, %s1210_s24 }
 0xe6d   :  { %v1117_v2 = vpop.eup %1116 }
 0xe6e   :  { %v662_v52 = vadd.f32 1.0, %v1117_v2 }
 0xe70   :  { %1118 = vrcp.f32 %v662_v52 }
 0xe7d   :  { %v1119_v3 = vpop.eup %1118 }
 0xe7e   :  { %v666_v4 = vmul.f32 %v1119_v3, %v573_v41 }
 0xede   :  { %v669_v53 = vpop.permute.xlu1 %668 }
 0xedf   :  { %v671_v0 = vmul.f32 %v1119_v3, %v669_v53 }
 0xee1   :  { %673 = vrot.lane.b32.xlu0 %v671_v0, %s1211_s25 }
 0xf53   :  { %v674_v54 = vpop.permute.xlu0 %673 }
 0xf54   :  { %v676_v55 = vadd.f32 %v674_v54, %v666_v4 }
 0xf56   :  { %1120 = vtanh.f32 %v676_v55 }
 0xf63   :  { %v1121_v56 = vpop.eup %1120 }
 0xf64   :  { %679 = vrot.lane.b32.xlu1 %v1121_v56, %s1210_s24 }
 0xfd6   :  { %v680_v57 = vpop.permute.xlu1 %679 }
 0xfd7   :  { %v682_v58 = vmul.f32 %v1119_v3, %v680_v57 }
 0xfd9   :  { %687 = vrot.lane.b32.xlu0 %v682_v58, %s1211_s25 }
0x104b   :  { %v688_v59 = vpop.permute.xlu0 %687 }
0x104c   :  { %1051 = vmatmul.mubr.msk.f32.vlgmr.msra.gmra.mxu0 %vm47_vm0, %v688_v59 }
0x110c   :  { %v757_v62 = vpop.f32.mrf.mxu0 }
0x110d   :  { %v761_v63 = vadd.f32 %v757_v62, %v685_v61 }
0x110e   :  { %v1052_v5 = vpop.f32.mrf.mxu0 }
0x110f   :  { %1122 = vtanh.f32 %v761_v63  ;;  %v933_v8 = vmul.f32 -1.442695, %v761_v63 }
0x1111   :  { %1124 = vpow2.f32 %v933_v8 }
0x111c   :  { %v1123_v7 = vpop.eup %1122 }
0x111d   :  { %771 = vrot.lane.b32.xlu1 %v1123_v7, %s1210_s24 }
0x111e   :  { %v1125_v9 = vpop.eup %1124 }
0x111f   :  { %v765_v10 = vadd.f32 1.0, %v1125_v9 }
0x1121   :  { %1126 = vrcp.f32 %v765_v10 }
0x112e   :  { %v1127_v11 = vpop.eup %1126 }
0x112f   :  { %v769_v14 = vmul.f32 %v1127_v11, %v676_v55 }
0x118f   :  { %v772_v12 = vpop.permute.xlu1 %771 }
0x1190   :  { %v774_v13 = vmul.f32 %v1127_v11, %v772_v12 }
0x1192   :  { %776 = vrot.lane.b32.xlu0 %v774_v13, %s1211_s25 }
0x1204   :  { %v777_v15 = vpop.permute.xlu0 %776 }
0x1205   :  { %v779_v16 = vadd.f32 %v777_v15, %v769_v14 }
0x1207   :  { %1128 = vtanh.f32 %v779_v16 }
0x1214   :  { %v1129_v17 = vpop.eup %1128 }
0x1215   :  { %782 = vrot.lane.b32.xlu1 %v1129_v17, %s1210_s24 }
0x1287   :  { %v783_v18 = vpop.permute.xlu1 %782 }
0x1288   :  { %v785_v19 = vmul.f32 %v1127_v11, %v783_v18 }
0x128a   :  { %790 = vrot.lane.b32.xlu0 %v785_v19, %s1211_s25 }
0x12fc   :  { %v791_v20 = vpop.permute.xlu0 %790 }
0x12fd   :  { %1062 = vmatmul.mubr.msk.f32.vlgmr.msra.gmra.mxu1 %vm47_vm0, %v791_v20 }
0x13bd   :  { %v860_v23 = vpop.f32.mrf.mxu1 }
0x13be   :  { %v864_v24 = vadd.f32 %v860_v23, %v788_v22 }
0x13bf   :  { %v1063_v25 = vpop.f32.mrf.mxu1 }
0x13c0   :  { %1130 = vtanh.f32 %v864_v24  ;;  %v935_v27 = vmul.f32 -1.442695, %v864_v24 }
0x13c2   :  { %1132 = vpow2.f32 %v935_v27 }
0x13cd   :  { %v1131_v26 = vpop.eup %1130 }
0x13ce   :  { %874 = vrot.lane.b32.xlu1 %v1131_v26, %s1210_s24 }
0x13cf   :  { %v1133_v28 = vpop.eup %1132 }
0x13d0   :  { %v868_v29 = vadd.f32 1.0, %v1133_v28 }
0x13d2   :  { %1134 = vrcp.f32 %v868_v29 }
0x13df   :  { %v1135_v30 = vpop.eup %1134 }
0x13e0   :  { %v872_v33 = vmul.f32 %v1135_v30, %v779_v16 }
0x1440   :  { %v875_v31 = vpop.permute.xlu1 %874 }
0x1441   :  { %v877_v32 = vmul.f32 %v1135_v30, %v875_v31 }
0x1443   :  { %879 = vrot.lane.b32.xlu0 %v877_v32, %s1211_s25 }
0x14b5   :  { %v880_v34 = vpop.permute.xlu0 %879 }
0x14b6   :  { %v882_v6 = vadd.f32 %v880_v34, %v872_v33 }
0x14b8   :  { %1136 = vtanh.f32 %v882_v6 }
0x14c5   :  { %v1137_v35 = vpop.eup %1136 }
0x14c6   :  { %885 = vrot.lane.b32.xlu1 %v1137_v35, %s1210_s24 }
0x14ca   :  { %895 = vrot.lane.b32.xlu1 %v882_v6, %s1212_s2 }
0x1538   :  { %v886_v36 = vpop.permute.xlu1 %885 }
0x1539   :  { %v888_v37 = vmul.f32 %v1135_v30, %v886_v36 }
0x153b   :  { %890 = vrot.lane.b32.xlu0 %v888_v37, %s1211_s25 }
0x153c   :  { %v896_v38 = vpop.permute.xlu1 %895 }
0x153d   :  { %898 = vst.msk [vmem:[#allocation3] sm:$0xff] %vm47_vm0, %v896_v38 }
0x15ad   :  { %v891_v39 = vpop.permute.xlu0 %890 }
0x15ae   :  { %893 = vst.msk [vmem:[#allocation2] sm:$0xff] %vm47_vm0, %v891_v39  ;;  %902 = vst.msk [vmem:[#allocation9] sm:$0xff] %vm47_vm0, %v891_v39 }
0x15af   :  { %1189 = shalt.err (!%p1186_p0)
}
0x15b0   :  { %912 = dma.vmem_to_hbm [thread:$0]  %s910_s27, 128, %s1395_s3, [#allocation6]  }
0x15b1   :  { %1202 = dma.done.wait [#allocation6], 128  }
0x15b2   :  { %1203 = vsyncadd [#allocation6], 4294967168 }
0x15b3   :  { %916 = vsyncpa [#allocation5], 1 }
0x15b4   :  { %917 = vsyncpa [#allocation8], 1 }
0x15b5   :  { %918 = vsyncpa [#allocation6], 1 }

</bundles_post_ra>
